<compile_context>
chip_gen: v6e
topology: v6e:2x2x1
jax: 0.10.0
libtpu: 0.0.40
codegen_flags: <defaults>
</compile_context>

<pallas_src>
import functools

import jax
import jax.numpy as jnp
from jax.experimental import pallas as pl
from jax.experimental.pallas import tpu as pltpu


def _cdiv(a, b):
    return -(-a // b)


def _round_up(a, b):
    return _cdiv(a, b) * b


def _chip_defaults():
    """(max_tile_n, vmem_limit_bytes, num_parallel) tuned per TPU generation."""
    try:
        vmem_bytes = int(pltpu.get_tpu_info().vmem_capacity_bytes)
    except Exception:
        # Unknown chip / query unavailable: conservative, known-good settings.
        return 32768, 32 * 1024 * 1024, 1
    vmem_limit = min(vmem_bytes * 3 // 4, 112 * 1024 * 1024)
    if vmem_bytes <= 96 * 1024 * 1024:
        # v7x-class: 64 MiB VMEM per TensorCore, 2 TensorCores per chip.
        return 65536, vmem_limit, 2
    # v5e / v6e: 128 MiB VMEM, single TensorCore.
    return 131072, vmem_limit, 1


def _ece_kernel(pred_ref, labels_ref, out_ref, acc_ref, *,
                margin, eps, inv_n, n_total):
    # pred_ref:   (C, tile_n) logits — classes on sublanes, batch on lanes.
    # labels_ref: (1, tile_n) int32 targets.
    # out_ref:    (1, 8, 128) this core's partial mean (broadcast-filled).
    # acc_ref:    (1, tile_n) f32 per-lane running sum for this core.
    x = pred_ref[...].astype(jnp.float32)
    labels = labels_ref[...]
    tn = x.shape[1]

    @pl.when(pl.program_id(1) == 0)
    def _init():
        acc_ref[...] = jnp.zeros_like(acc_ref)

    # Softmax pieces over the class axis (axis 0); exp issued exactly once.
    x_max = jnp.max(x, axis=0, keepdims=True)                        # (1, tn)
    e = jnp.exp(x - x_max)                                           # (C, tn)
    s = jnp.sum(e, axis=0, keepdims=True)                            # (1, tn)
    e_max = jnp.max(e, axis=0, keepdims=True)                        # (1, tn)

    # Gather exp at the target class via a one-hot select (no real gather).
    class_ids = jax.lax.broadcasted_iota(jnp.int32, x.shape, 0)      # (C, tn)
    e_t = jnp.sum(jnp.where(class_ids == labels, e, 0.0),
                  axis=0, keepdims=True)                             # (1, tn)

    # argmax(softmax(x)) == argmax(e); "target is argmax" <=> e_t == max(e).
    # (On exact ties this bumps any tied max class, vs torch's first index.)
    p_t = e_t * pl.reciprocal(s, approx=False)
    bump = jnp.where(e_t == e_max, jnp.float32(margin), jnp.float32(0.0))
    val = (p_t + bump) * jnp.float32(1.0 / (margin + 1.0))
    val = jnp.maximum(val, jnp.float32(eps))
    nll = -jnp.log(val)                                              # (1, tn)

    # Mask out-of-range batch columns (partial / over-covered blocks) and
    # accumulate lane-wise; no cross-lane reduction until the finalize step.
    tile_idx = pl.program_id(0) * pl.num_programs(1) + pl.program_id(1)
    col = jax.lax.broadcasted_iota(jnp.int32, (1, tn), 1) + tile_idx * tn
    acc_ref[...] += jnp.where(col < n_total, nll, 0.0)

    @pl.when(pl.program_id(1) == pl.num_programs(1) - 1)
    def _finalize():
        partial = jnp.sum(acc_ref[...], axis=1, keepdims=True)       # (1, 1)
        partial = partial * jnp.float32(inv_n)
        out_ref[...] = jnp.broadcast_to(partial.reshape(1, 1, 1), out_ref.shape)


@functools.partial(
    jax.jit,
    static_argnames=("m", "eps", "pred_layout", "max_tile_n",
                     "vmem_limit_bytes", "num_parallel"))
def ece_loss(pred, target, *, m, eps=1e-8, pred_layout="nc",
             max_tile_n=None, vmem_limit_bytes=None, num_parallel=None):
    """Pallas implementation of ECELoss(m, eps).forward(pred, target) -> scalar.

    pred_layout="nc": pred is (N, C) as in the PyTorch module (transposed here,
                      inside the same jit so a producer in the same program can
                      fuse / absorb it).
    pred_layout="cn": pred is already (C, N) lane-dense (preferred: the
                      producer emits the layout the kernel wants for free).
    """
    d_tile, d_vmem, d_par = _chip_defaults()
    max_tile_n = d_tile if max_tile_n is None else max_tile_n
    vmem_limit_bytes = d_vmem if vmem_limit_bytes is None else vmem_limit_bytes
    num_parallel = d_par if num_parallel is None else num_parallel

    if pred_layout == "cn":
        c, n = pred.shape
        pred_cn = pred
    else:
        n, c = pred.shape
        pred_cn = jnp.transpose(pred, (1, 0))    # lane-dense: batch on lanes
    labels = target.astype(jnp.int32).reshape(1, n)

    tile_n = min(max_tile_n, _round_up(_cdiv(n, num_parallel), 128))
    tiles_per_core = _cdiv(n, num_parallel * tile_n)
    n_blocks_valid = _cdiv(n, tile_n)            # last block that overlaps data

    def _in_map(i, j):
        # Clamp so an over-covered core re-reads the last valid (partial)
        # block instead of issuing a fully out-of-bounds window; its
        # contribution is zeroed by the in-kernel column mask.
        return (0, jnp.minimum(i * tiles_per_core + j, n_blocks_valid - 1))

    kernel = functools.partial(
        _ece_kernel, margin=float(m), eps=float(eps), inv_n=1.0 / n, n_total=n)

    out = pl.pallas_call(
        kernel,
        out_shape=jax.ShapeDtypeStruct((num_parallel, 8, 128), jnp.float32),
        grid_spec=pltpu.PrefetchScalarGridSpec(
            num_scalar_prefetch=0,
            grid=(num_parallel, tiles_per_core),
            in_specs=[
                pl.BlockSpec((c, tile_n), _in_map),
                pl.BlockSpec((1, tile_n), _in_map),
            ],
            out_specs=pl.BlockSpec((1, 8, 128), lambda i, j: (i, 0, 0)),
            scratch_shapes=[pltpu.VMEM((1, tile_n), jnp.float32)],
        ),
        # TODO(synk): on v7x, verify in a profile that the leading "parallel"
        # axis actually lands on both TensorCores; if not, switch it to
        # pltpu.CORE_PARALLEL (or pl.core_map + pltpu.create_tensorcore_mesh).
        compiler_params=pltpu.CompilerParams(
            dimension_semantics=("parallel", "arbitrary"),
            vmem_limit_bytes=vmem_limit_bytes,
        ),
    )(pred_cn, labels)

    # Per-core partials are already scaled by 1/N; sum across cores.
    return jnp.sum(out[:, 0, 0])


def _reference(logits, target, m, eps=1e-8):
    """Pure-JAX mirror of the PyTorch module, for verification."""
    probs = jax.nn.softmax(logits.astype(jnp.float32), axis=1)
    n = logits.shape[0]
    am = jnp.argmax(probs, axis=1)
    probs = probs.at[jnp.arange(n), am].add(m)
    probs = probs / (m + 1.0)
    probs = jnp.maximum(probs, eps)
    nll = -jnp.log(probs)[jnp.arange(n), target]
    return jnp.mean(nll)


if __name__ == "__main__":
    num_classes = 10
    m = 0.5
    eps = 1e-8
    key = jax.random.PRNGKey(0)
    k1, k2, k3 = jax.random.split(key, 3)

    cases = [
        # (batch, kwargs) — the second/third cases force multi-tile / 2-way
        # grids with partial and over-covered blocks (no physical padding).
        (64, {}),
        (187, {"num_parallel": 2, "max_tile_n": 128}),
        (300, {"num_parallel": 1, "max_tile_n": 128}),
    ]
    for subkey, (batch, kw) in zip((k1, k2, k3), cases):
        kp, kt = jax.random.split(subkey)
        pred = jax.random.normal(kp, (batch, num_classes), dtype=jnp.float32)
        target = jax.random.randint(kt, (batch,), 0, num_classes,
                                    dtype=jnp.int32)
        loss = jax.block_until_ready(ece_loss(pred, target, m=m, eps=eps, **kw))
        ref = _reference(pred, target, m, eps)
        assert jnp.allclose(loss, ref, rtol=1e-5, atol=1e-5), (batch, loss, ref)

    print("KERNEL_OK")
</pallas_src>

<mosaic_0001>
module attributes {stable_mosaic.version = 11 : i64} {
  func.func @_ece_kernel(%arg0: i32, %arg1: i32, %arg2: memref<10x128xf32, #tpu.memory_space<vmem>>, %arg3: memref<1x128xi32, #tpu.memory_space<vmem>>, %arg4: memref<1x8x128xf32, #tpu.memory_space<vmem>>, %arg5: memref<1x128xf32, #tpu.memory_space<vmem>>) attributes {dimension_semantics = [#tpu.dimension_semantics<parallel>, #tpu.dimension_semantics<arbitrary>], iteration_bounds = array<i64: 1, 1>, scalar_prefetch = 0 : i64, scratch_operands = 1 : i64, tpu.core_type = #tpu.core_type<tc>, window_params = [{transform_indices = @transform_0, window_bounds = array<i64: 10, 128>}, {transform_indices = @transform_1, window_bounds = array<i64: 1, 128>}, {transform_indices = @transform_2, window_bounds = array<i64: 1, 8, 128>}]} {
    %c0 = arith.constant 0 : index
    %c0_0 = arith.constant 0 : index
    %0 = vector.load %arg2[%c0, %c0_0] : memref<10x128xf32, #tpu.memory_space<vmem>>, vector<10x128xf32>
    %c0_1 = arith.constant 0 : index
    %c0_2 = arith.constant 0 : index
    %1 = vector.load %arg3[%c0_1, %c0_2] : memref<1x128xi32, #tpu.memory_space<vmem>>, vector<1x128xi32>
    %c0_i32 = arith.constant 0 : i32
    %2 = arith.cmpi eq, %arg1, %c0_i32 : i32
    %3 = arith.extui %2 : i1 to i32
    %c0_i32_3 = arith.constant 0 : i32
    %4 = arith.cmpi ne, %3, %c0_i32_3 : i32
    scf.if %4 {
      %cst_20 = arith.constant 0.000000e+00 : f32
      %51 = vector.broadcast %cst_20 : f32 to vector<1x128xf32>
      %c0_21 = arith.constant 0 : index
      %c0_22 = arith.constant 0 : index
      %52 = vector.load %arg5[%c0_21, %c0_22] : memref<1x128xf32, #tpu.memory_space<vmem>>, vector<1x128xf32>
      tpu.vector_store %arg5[%c0_21, %c0_22], %51 {strides = array<i32>} : memref<1x128xf32, #tpu.memory_space<vmem>>, vector<1x128xf32>,
    } else {
    }
    %cst = arith.constant dense<0xFF800000> : vector<128xf32>
    %5 = vector.multi_reduction <maximumf>, %0, %cst [0] : vector<10x128xf32> to vector<128xf32>
    %6 = vector.shape_cast %5 : vector<128xf32> to vector<1x128xf32>
    %7 = vector.broadcast %6 : vector<1x128xf32> to vector<10x128xf32>
    %8 = arith.subf %0, %7 : vector<10x128xf32>
    %9 = math.exp %8 : vector<10x128xf32>
    %cst_4 = arith.constant dense<0.000000e+00> : vector<128xf32>
    %10 = vector.multi_reduction <add>, %9, %cst_4 [0] : vector<10x128xf32> to vector<128xf32>
    %11 = vector.shape_cast %10 : vector<128xf32> to vector<1x128xf32>
    %cst_5 = arith.constant dense<0xFF800000> : vector<128xf32>
    %12 = vector.multi_reduction <maximumf>, %9, %cst_5 [0] : vector<10x128xf32> to vector<128xf32>
    %13 = vector.shape_cast %12 : vector<128xf32> to vector<1x128xf32>
    %14 = tpu.iota {dimensions = array<i32: 0>} : vector<10x128xi32>
    %15 = vector.broadcast %1 : vector<1x128xi32> to vector<10x128xi32>
    %16 = arith.cmpi eq, %14, %15 : vector<10x128xi32>
    %cst_6 = arith.constant 0.000000e+00 : f32
    %17 = vector.broadcast %cst_6 : f32 to vector<10x128xf32>
    %18 = arith.select %16, %9, %17 : vector<10x128xi1>, vector<10x128xf32>
    %cst_7 = arith.constant dense<0.000000e+00> : vector<128xf32>
    %19 = vector.multi_reduction <add>, %18, %cst_7 [0] : vector<10x128xf32> to vector<128xf32>
    %20 = vector.shape_cast %19 : vector<128xf32> to vector<1x128xf32>
    %21 = tpu.reciprocal %11 : vector<1x128xf32> -> vector<1x128xf32>
    %22 = arith.mulf %20, %21 : vector<1x128xf32>
    %23 = arith.cmpf oeq, %20, %13 : vector<1x128xf32>
    %cst_8 = arith.constant 5.000000e-01 : f32
    %cst_9 = arith.constant 0.000000e+00 : f32
    %24 = vector.broadcast %cst_8 : f32 to vector<1x128xf32>
    %25 = vector.broadcast %cst_9 : f32 to vector<1x128xf32>
    %26 = arith.select %23, %24, %25 : vector<1x128xi1>, vector<1x128xf32>
    %27 = arith.addf %22, %26 : vector<1x128xf32>
    %cst_10 = arith.constant 0.666666686 : f32
    %28 = vector.broadcast %cst_10 : f32 to vector<1x128xf32>
    %29 = arith.mulf %27, %28 : vector<1x128xf32>
    %cst_11 = arith.constant 9.99999993E-9 : f32
    %30 = vector.broadcast %cst_11 : f32 to vector<1x128xf32>
    %31 = arith.maximumf %29, %30 : vector<1x128xf32>
    %32 = math.log %31 : vector<1x128xf32>
    %cst_12 = arith.constant 0.000000e+00 : f32
    %33 = vector.broadcast %cst_12 : f32 to vector<1x128xf32>
    %34 = arith.subf %33, %32 : vector<1x128xf32>
    %c1_i32 = arith.constant 1 : i32
    %35 = arith.muli %arg0, %c1_i32 : i32
    %36 = arith.addi %35, %arg1 : i32
    %37 = tpu.iota {dimensions = array<i32: 1>} : vector<1x128xi32>
    %c128_i32 = arith.constant 128 : i32
    %38 = arith.muli %36, %c128_i32 : i32
    %39 = vector.broadcast %38 : i32 to vector<1x128xi32>
    %40 = arith.addi %37, %39 : vector<1x128xi32>
    %c0_13 = arith.constant 0 : index
    %c0_14 = arith.constant 0 : index
    %41 = vector.load %arg5[%c0_13, %c0_14] : memref<1x128xf32, #tpu.memory_space<vmem>>, vector<1x128xf32>
    %c64_i32 = arith.constant 64 : i32
    %42 = vector.broadcast %c64_i32 : i32 to vector<1x128xi32>
    %43 = arith.cmpi slt, %40, %42 : vector<1x128xi32>
    %cst_15 = arith.constant 0.000000e+00 : f32
    %44 = vector.broadcast %cst_15 : f32 to vector<1x128xf32>
    %45 = arith.select %43, %34, %44 : vector<1x128xi1>, vector<1x128xf32>
    %46 = arith.addf %41, %45 : vector<1x128xf32>
    %c0_16 = arith.constant 0 : index
    %c0_17 = arith.constant 0 : index
    %47 = vector.load %arg5[%c0_16, %c0_17] : memref<1x128xf32, #tpu.memory_space<vmem>>, vector<1x128xf32>
    tpu.vector_store %arg5[%c0_16, %c0_17], %46 {strides = array<i32>} : memref<1x128xf32, #tpu.memory_space<vmem>>, vector<1x128xf32>,
    %c0_i32_18 = arith.constant 0 : i32
    %48 = arith.cmpi eq, %arg1, %c0_i32_18 : i32
    %49 = arith.extui %48 : i1 to i32
    %c0_i32_19 = arith.constant 0 : i32
    %50 = arith.cmpi ne, %49, %c0_i32_19 : i32
    scf.if %50 {
      %c0_20 = arith.constant 0 : index
      %c0_21 = arith.constant 0 : index
      %51 = vector.load %arg5[%c0_20, %c0_21] : memref<1x128xf32, #tpu.memory_space<vmem>>, vector<1x128xf32>
      %cst_22 = arith.constant dense<0.000000e+00> : vector<1xf32>
      %52 = vector.multi_reduction <add>, %51, %cst_22 [1] : vector<1x128xf32> to vector<1xf32>
      %53 = vector.shape_cast %52 : vector<1xf32> to vector<1x1xf32>
      %cst_23 = arith.constant 1.562500e-02 : f32
      %54 = vector.broadcast %cst_23 : f32 to vector<1x1xf32>
      %55 = arith.mulf %53, %54 : vector<1x1xf32>
      %56 = vector.shape_cast %55 : vector<1x1xf32> to vector<1x1x1xf32>
      %57 = vector.shape_cast %56 : vector<1x1x1xf32> to vector<1x1x1xf32>
      %58 = vector.broadcast %57 : vector<1x1x1xf32> to vector<1x8x128xf32>
      %c0_24 = arith.constant 0 : index
      %c0_25 = arith.constant 0 : index
      %c0_26 = arith.constant 0 : index
      %59 = vector.load %arg4[%c0_24, %c0_25, %c0_26] : memref<1x8x128xf32, #tpu.memory_space<vmem>>, vector<1x8x128xf32>
      tpu.vector_store %arg4[%c0_24, %c0_25, %c0_26], %58 {strides = array<i32>} : memref<1x8x128xf32, #tpu.memory_space<vmem>>, vector<1x8x128xf32>,
    } else {
    }
    return
  }
  func.func @transform_0(%arg0: i32, %arg1: i32) -> (i32, i32) {
    %c1_i32 = arith.constant 1 : i32
    %0 = arith.muli %arg0, %c1_i32 : i32
    %1 = arith.addi %0, %arg1 : i32
    %c0_i32 = arith.constant 0 : i32
    %2 = arith.minsi %1, %c0_i32 : i32
    %c0_i32_0 = arith.constant 0 : i32
    %c0_i32_1 = arith.constant 0 : i32
    return %c0_i32_0, %2 : i32, i32
  }
  func.func @transform_1(%arg0: i32, %arg1: i32) -> (i32, i32) {
    %c1_i32 = arith.constant 1 : i32
    %0 = arith.muli %arg0, %c1_i32 : i32
    %1 = arith.addi %0, %arg1 : i32
    %c0_i32 = arith.constant 0 : i32
    %2 = arith.minsi %1, %c0_i32 : i32
    %c0_i32_0 = arith.constant 0 : i32
    %c0_i32_1 = arith.constant 0 : i32
    return %c0_i32_0, %2 : i32, i32
  }
  func.func @transform_2(%arg0: i32, %arg1: i32) -> (i32, i32, i32) {
    %c0_i32 = arith.constant 0 : i32
    %c0_i32_0 = arith.constant 0 : i32
    %c0_i32_1 = arith.constant 0 : i32
    return %arg0, %c0_i32, %c0_i32_0 : i32, i32, i32
  }
}

</mosaic_0001>

<bundles_post_ra>
// kernel: ece_loss.1
= control target key start
LH: loop header
LB: loop body
LE: loop exit
PB: predicated region body
PF: predicated region fallthrough
CT: control target
= control target key end

     0   :  { %7 = vsyncpa [#allocation4], 0  ;;  %s195_s9 = smov [#allocation3]   ;;  %s227_s0 = inlined_call_operand.hbm [shape: f32[10,64], index: 0, kind: input, shape index: {}]   ;;  %s228_s1 = inlined_call_operand.vmem [shape: s32[1,64], index: 1, kind: input, shape index: {}]   ;;  %s229_s2 = inlined_call_operand.vmem [shape: f32[1,8,128], index: 2, kind: output, shape index: {}]  }
   0x1   :  { %s18_s10 = sshll.u32 %s195_s9, 4  ;;  %s19_s10 = int_to_ptr.vmem [resolvable:$true] %s18_s10 }
   0x2   :  { %s181_s11 = scalar_lea.vmem %s19_s10, 256  ;;  %p186_p1 = scmp.lt.s32.totalorder %s19_s10, %s19_s10 }
   0x3   :  { %p182_p0 = scmp.ne.s32.totalorder %s19_s10, %s181_s11  ;;  %p187_p2 = scmp.lt.s32.totalorder %s181_s11, %s181_s11 }
   0x5   :  { %p188_p3 = por %p187_p2, %p186_p1 }
   0x7   :  { %p189_p4 = pnand %p188_p3, %p182_p0 }
   0x9   :  { %192 = shalt.err (!%p189_p4)
}
   0xa   :  { %s196_s12 = smov 128   ;;  %s197_s13 = smov 8  }
   0xb   :  { %24 = dma.hbm_to_vmem [thread:$0]  %s227_s0, 256, %s19_s10, [#allocation4], %s196_s12, %s196_s12, %s197_s13  }
   0xc   :  { %193 = dma.done.wait [#allocation4], 256  }
   0xd   :  { %194 = vsyncadd [#allocation4], 4294967040  ;;  %v198_v0 = vmov 0.0   ;;  %vm65_vm0 = vcmask 1041408   ;;  %v57_v1 = vld [vmem:[#allocation3] sm:$0xff]  ;;  %v96_v15 = vlaneseq  ;;  %vm140_vm5 = vcmask 1040384  }
   0xe   :  { %64 = vst [vmem:[#allocation2] sm:$0x1] %v198_v0  ;;  %v58_v2 = vld [vmem:[#allocation3 + $0x8] sm:$0x3]  ;;  %v160_v17 = vld [vmem:[%s228_s1] ss:$0 sm:$0xff] }
   0xf   :  { %v66_v3 = vsel %vm65_vm0, %v58_v2, -inf  ;;  %v97_v16 = vshrl.u32 %v96_v15, 7  ;;  %v127_v53 = vand.u32 127, %v96_v15 }
  0x10   :  { %v67_v4 = vmax.f32 %v57_v1, %v66_v3 }
  0x11   :  { %v98_v18 = vadd.s32 8, %v97_v16  ;;  %vm103_vm1 = vcmp.eq.s32.totalorder %v97_v16, %v160_v17  ;;  %vm132_vm4 = vcmp.lt.s32.totalorder %v127_v53, 64  ;;  %v147_v62 = vsub.s32 0, %v97_v16 }
  0x12   :  { %v68_v5 = vrot.slane %v67_v4, 4 }
  0x13   :  { %vm104_vm2 = vcmp.eq.s32.totalorder %v98_v18, %v160_v17 }
  0x14   :  { %v69_v6 = vmax.f32 %v67_v4, %v68_v5 }
  0x15   :  { %v131_v57 = vld [vmem:[#allocation2] sm:$0x1] }
  0x16   :  { %v70_v7 = vrot.slane %v69_v6, 2 }
  0x18   :  { %v71_v8 = vmax.f32 %v69_v6, %v70_v7 }
  0x1a   :  { %v72_v9 = vrot.slane %v71_v8, 1 }
  0x1c   :  { %v73_v10 = vmax.f32 %v71_v8, %v72_v9 }
  0x1e   :  { %v74_v11 = vsub.f32 %v57_v1, %v73_v10  ;;  %v75_v12 = vsub.f32 %v58_v2, %v73_v10 }
  0x20   :  { %v76_v13 = vmul.f32 1.442695, %v74_v11  ;;  %v78_v14 = vmul.f32 1.442695, %v75_v12 }
  0x22   :  { %165 = vpow2.f32 %v76_v13 }
  0x23   :  { %167 = vpow2.f32 %v78_v14 }
  0x2f   :  { %v166_v19 = vpop.eup %165 }
  0x30   :  { %v168_v20 = vpop.eup %167  ;;  %v105_v21 = vsel %vm103_vm1, %v166_v19, 0.0 }
  0x31   :  { %v80_v22 = vsel %vm65_vm0, %v168_v20, 0.0  ;;  %v88_v23 = vsel %vm65_vm0, %v168_v20, -inf  ;;  %v106_v24 = vsel %vm104_vm2, %v168_v20, 0.0 }
  0x32   :  { %v81_v25 = vadd.f32 %v166_v19, %v80_v22  ;;  %v89_v26 = vmax.f32 %v166_v19, %v88_v23  ;;  %v107_v27 = vsel %vm65_vm0, %v106_v24, 0.0 }
  0x33   :  { %v108_v28 = vadd.f32 %v107_v27, %v105_v21 }
  0x34   :  { %v82_v29 = vrot.slane %v81_v25, 4  ;;  %v90_v30 = vrot.slane %v89_v26, 4 }
  0x35   :  { %v109_v31 = vrot.slane %v108_v28, 4 }
  0x36   :  { %v83_v32 = vadd.f32 %v82_v29, %v81_v25  ;;  %v91_v33 = vmax.f32 %v89_v26, %v90_v30 }
  0x37   :  { %v110_v34 = vadd.f32 %v109_v31, %v108_v28 }
  0x38   :  { %v84_v35 = vrot.slane %v83_v32, 2  ;;  %v92_v37 = vrot.slane %v91_v33, 2 }
  0x39   :  { %v111_v38 = vrot.slane %v110_v34, 2 }
  0x3a   :  { %v85_v36 = vadd.f32 %v84_v35, %v83_v32  ;;  %v93_v41 = vmax.f32 %v91_v33, %v92_v37 }
  0x3b   :  { %v112_v42 = vadd.f32 %v111_v38, %v110_v34 }
  0x3c   :  { %v86_v39 = vrot.slane %v85_v36, 1  ;;  %v94_v43 = vrot.slane %v93_v41, 1 }
  0x3d   :  { %v113_v44 = vrot.slane %v112_v42, 1 }
  0x3e   :  { %v87_v40 = vadd.f32 %v86_v39, %v85_v36  ;;  %v95_v45 = vmax.f32 %v93_v41, %v94_v43 }
  0x3f   :  { %v114_v46 = vadd.f32 %v113_v44, %v112_v42 }
  0x40   :  { %169 = vrcp.f32 %v87_v40 }
  0x41   :  { %vm117_vm3 = vcmp.eq.f32.partialorder %v114_v46, %v95_v45 }
  0x42   :  { %v118_v48 = vsel %vm117_vm3, 0.5, %v198_v0 }
  0x4d   :  { %v170_v47 = vpop.eup %169 }
  0x4e   :  { %v116_v49 = vmul.f32 %v170_v47, %v114_v46 }
  0x50   :  { %v119_v50 = vadd.f32 %v118_v48, %v116_v49 }
  0x52   :  { %v120_v51 = vmul.f32 0.6666667, %v119_v50 }
  0x54   :  { %v121_v52 = vmax.f32 %v120_v51, 1e-08 }
  0x56   :  { %171 = vlog2.f32 %v121_v52 }
  0x63   :  { %v172_v54 = vpop.eup %171 }
  0x64   :  { %v123_v55 = vmul.f32 0.6931472, %v172_v54 }
  0x66   :  { %v124_v56 = vsub.f32 0.0, %v123_v55 }
  0x68   :  { %v133_v58 = vsel %vm132_vm4, %v124_v56, 0.0 }
  0x69   :  { %v134_v59 = vadd.f32 %v133_v58, %v131_v57 }
  0x6b   :  { %135 = vst [vmem:[#allocation2] sm:$0x1] %v134_v59 }
  0x72   :  { %v139_v60 = vld [vmem:[#allocation2] sm:$0x1] }
  0x73   :  { %v141_v61 = vsel %vm140_vm5, %v139_v60, 0.0 }
  0x74   :  { %142 = vadd.xlane.f32.xlu0 %v141_v61 }
  0xfd   :  { %v143_v63 = vpop.xlane.xlu0 %142 }
  0xfe   :  { %v144_v0 = vmul.f32 0.015625, %v143_v63 }
 0x100   :  { %v148_v1 = vrot.slane %v144_v0, %v147_v62 }
 0x102   :  { %149 = vst [vmem:[%s229_s2] sm:$0xff] %v148_v1 }
 0x103   :  { %154 = vsyncpa [#allocation4], 1 }

</bundles_post_ra>
